<compile_context>
chip_gen: v7x
topology: tpu7x:2x2x1
jax: 0.10.0
libtpu: 0.0.40
codegen_flags: <defaults>
</compile_context>

<pallas_src>
import functools

import jax
import jax.numpy as jnp
from jax.experimental import pallas as pl
from jax.experimental.pallas import tpu as pltpu


_SMALL_K_THRESHOLD = 8    # k <= this -> iterative extraction, else bisection
_BISECT_ITERS = 32        # enough to converge to ~ulp of the value range


def get_positive_k(k, n):
    """Same rule as WildcatPool2dFunction.get_positive_k."""
    if k <= 0:
        return 0
    elif k < 1:
        return int(round(k * n))
    elif k > n:
        return int(n)
    else:
        return int(k)


def _round_up(x, m):
    return ((x + m - 1) // m) * m


def _device_kind():
    try:
        return jax.devices()[0].device_kind.lower()
    except Exception:
        return ""


def _vmem_budget():
    """(per-tile f32 budget, vmem_limit_bytes) sized per TPU generation."""
    cap = 64 * 1024 * 1024
    try:
        cap = int(pltpu.get_tpu_info().vmem_capacity_bytes)
    except Exception:
        pass  # conservative (v7x-sized) fallback
    if cap >= 100 * 1024 * 1024:          # v5e / v6e: 128 MiB physical VMEM
        return 20 * 1024 * 1024, 96 * 1024 * 1024
    return 6 * 1024 * 1024, 48 * 1024 * 1024   # v7x: 64 MiB physical VMEM


def _choose_tile_c(C, n, budget_bytes):
    """Largest 8-aligned channel tile whose f32 tile fits the budget."""
    row_bytes = n * 4
    max_tile = max(8, (budget_bytes // max(row_bytes, 1)) // 8 * 8)
    return min(max_tile, _round_up(C, 8))


def _topk_sum_small(x, col, k, n):
    """Sum of the k largest values along the last axis (small k).

    Iterative extremum extraction with first-occurrence masking (matches
    sum-of-sorted-prefix semantics, including ties).  The final extraction is
    a bare max -- masking only exists to prepare the next iteration.
    """
    sentinel = jnp.asarray(-jnp.inf, x.dtype)

    def masked_extract(_, carry):
        xw, acc = carry
        m = jnp.max(xw, axis=-1, keepdims=True)              # (TILE_C, 1)
        acc = acc + m.astype(jnp.float32)
        # index of the first occurrence of the extremum
        idx = jnp.min(jnp.where(xw == m, col, n), axis=-1, keepdims=True)
        xw = jnp.where(col == idx, sentinel, xw)
        return xw, acc

    acc = jnp.zeros((x.shape[0], 1), jnp.float32)
    steps = k - 1
    if steps > 0:
        x, acc = jax.lax.fori_loop(0, steps, masked_extract, (x, acc),
                                   unroll=True)
    return acc + jnp.max(x, axis=-1, keepdims=True).astype(jnp.float32)


def _topk_sum_bisect(x, k):
    """Sum of the k largest values along the last axis (large k).

    Fixed-iteration bisection on the k-th largest value (one compare + one
    count reduce per iteration), then a single thresholded sum with a tie
    correction.  Cost is ~log2(range)-bound instead of k-bound.
    """
    xf = x.astype(jnp.float32)
    kf = jnp.float32(k)
    lo = jnp.min(xf, axis=-1, keepdims=True)                  # (TILE_C, 1)
    hi = jnp.max(xf, axis=-1, keepdims=True)

    def body(_, carry):
        lo, hi = carry
        mid = (lo + hi) * 0.5
        cnt = jnp.sum((xf >= mid).astype(jnp.float32), axis=-1, keepdims=True)
        ge = cnt >= kf                                        # invariant: count(x>=lo) >= k
        return jnp.where(ge, mid, lo), jnp.where(ge, hi, mid)

    lo, _ = jax.lax.fori_loop(0, _BISECT_ITERS, body, (lo, hi))
    gt = xf > lo
    sum_gt = jnp.sum(jnp.where(gt, xf, 0.0), axis=-1, keepdims=True)
    cnt_gt = jnp.sum(gt.astype(jnp.float32), axis=-1, keepdims=True)
    return sum_gt + lo * (kf - cnt_gt)                        # tie correction


def _topk_sum(x, col, k, n):
    if k <= _SMALL_K_THRESHOLD:
        return _topk_sum_small(x, col, k, n)
    return _topk_sum_bisect(x, k)


def _wildcat_kernel(x_ref, o_ref, *, kmax, kmin, alpha, n, compute_dtype,
                    bottom_active):
    # (1, n) iota; broadcasts against (TILE_C, n) operands so we never
    # materialize a full (TILE_C, n) index array.
    col = jax.lax.broadcasted_iota(jnp.int32, (1, n), 1)

    x = x_ref[0].astype(compute_dtype)                        # (TILE_C, n)
    res = _topk_sum(x, col, kmax, n) * (1.0 / float(kmax))

    if bottom_active:
        # bottom-k(x) == -top-k(-x); re-read the block so the top-pass working
        # copy is dead before the bottom-pass copy goes live.
        xb = -x_ref[0].astype(compute_dtype)
        res = (res - _topk_sum(xb, col, kmin, n) * (alpha / float(kmin))) * 0.5

    # plain block write: channels on sublanes, lane dim 1 -> no transpose,
    # no dynamic masked store.
    o_ref[0, :, :] = res.astype(o_ref.dtype)


def wildcat_pool2d(x, kmax=1, kmin=None, alpha=1.0):
    """Pallas implementation of WildcatPool2d.forward.  x: (B, C, H, W)."""
    if kmin is None:
        kmin = kmax
    B, C, H, W = x.shape
    n = H * W
    kmax_eff = get_positive_k(kmax, n)
    kmin_eff = get_positive_k(kmin, n)
    assert kmax_eff >= 1, "kmax must resolve to at least 1 (as in PyTorch usage)"
    bottom_active = kmin_eff > 0 and float(alpha) != 0.0

    tile_budget, vmem_limit = _vmem_budget()
    tile_c = _choose_tile_c(C, n, tile_budget)
    C_pad = _round_up(C, tile_c)
    num_c_tiles = C_pad // tile_c

    # bf16 stays packed for the compare/select passes on chips with bf16 VPU;
    # on v5e (no native bf16 VPU) promote the k>1 working copy to f32 once.
    kind = _device_kind()
    is_v5e = ("v5e" in kind) or ("v5 lite" in kind) or ("v5lite" in kind)
    needs_loop = kmax_eff > 1 or (bottom_active and kmin_eff > 1)
    if x.dtype == jnp.bfloat16 and not (is_v5e and needs_loop):
        compute_dtype = jnp.bfloat16
    else:
        compute_dtype = jnp.float32

    xr = x.reshape(B, C, n)
    if C_pad != C:
        xr = jnp.pad(xr, ((0, 0), (0, C_pad - C), (0, 0)))

    kernel = functools.partial(
        _wildcat_kernel, kmax=kmax_eff, kmin=kmin_eff, alpha=float(alpha),
        n=n, compute_dtype=compute_dtype, bottom_active=bottom_active)

    passes = min(kmax_eff, _BISECT_ITERS + 2)
    if bottom_active:
        passes += min(kmin_eff, _BISECT_ITERS + 2)
    cost = pl.CostEstimate(
        flops=int(4 * passes * B * C_pad * n),
        transcendentals=0,
        bytes_accessed=int(B * C_pad * n * xr.dtype.itemsize
                           + B * C_pad * x.dtype.itemsize))

    out = pl.pallas_call(
        kernel,
        out_shape=jax.ShapeDtypeStruct((B, C_pad, 1), x.dtype),
        grid=(B, num_c_tiles),
        # one (batch, channel-tile) slab per grid step; second-minor block dim
        # is 8-aligned, minor dim is the full spatial extent.
        in_specs=[pl.BlockSpec((1, tile_c, n), lambda b, c: (b, c, 0))],
        # disjoint (1, tile_c, 1) output block per grid step.
        out_specs=pl.BlockSpec((1, tile_c, 1), lambda b, c: (b, c, 0)),
        compiler_params=pltpu.CompilerParams(
            dimension_semantics=("parallel", "parallel"),
            vmem_limit_bytes=vmem_limit),
        cost_estimate=cost,
    )(xr)
    return out.reshape(B, C_pad)[:, :C]


def wildcat_pool2d_ref(x, kmax=1, kmin=None, alpha=1.0):
    """Pure-JAX reference (sort-based), mirrors the PyTorch forward."""
    if kmin is None:
        kmin = kmax
    B, C, H, W = x.shape
    n = H * W
    km = get_positive_k(kmax, n)
    kn = get_positive_k(kmin, n)
    s = jnp.sort(x.reshape(B, C, n), axis=2)[..., ::-1]   # descending
    out = s[..., :km].sum(axis=2) / km
    if kn > 0 and alpha != 0.0:
        out = (out + s[..., n - kn:].sum(axis=2) * (alpha / kn)) / 2.0
    return out


if __name__ == "__main__":
    key = jax.random.PRNGKey(0)
    B, C, H, W = 2, 4, 16, 16
    x = jax.random.normal(key, (B, C, H, W), dtype=jnp.float32)

    # config 1: small integer k (unrolled extraction), both top and bottom paths
    out = jax.block_until_ready(wildcat_pool2d(x, kmax=2, kmin=None, alpha=0.7))
    ref = wildcat_pool2d_ref(x, kmax=2, kmin=None, alpha=0.7)
    assert out.shape == (B, C), out.shape
    assert jnp.allclose(out, ref, atol=1e-5, rtol=1e-5), (out, ref)

    # config 2: fractional k -> large effective k exercises the bisection path
    out2 = jax.block_until_ready(wildcat_pool2d(x, kmax=0.05, kmin=None, alpha=1.0))
    ref2 = wildcat_pool2d_ref(x, kmax=0.05, kmin=None, alpha=1.0)
    assert out2.shape == (B, C), out2.shape
    assert jnp.allclose(out2, ref2, atol=1e-5, rtol=1e-5), (out2, ref2)

    # config 3: k = 1 fast path (single bare max, HBM-bound)
    out3 = jax.block_until_ready(wildcat_pool2d(x, kmax=1, kmin=None, alpha=1.0))
    ref3 = wildcat_pool2d_ref(x, kmax=1, kmin=None, alpha=1.0)
    assert jnp.allclose(out3, ref3, atol=1e-5, rtol=1e-5), (out3, ref3)

    print("KERNEL_OK")
</pallas_src>

<mosaic_0001>
module attributes {stable_mosaic.version = 11 : i64} {
  func.func @_wildcat_kernel(%arg0: i32, %arg1: i32, %arg2: memref<1x8x256xf32, #tpu.memory_space<vmem>>, %arg3: memref<1x8x1xf32, #tpu.memory_space<vmem>>) attributes {dimension_semantics = [#tpu.dimension_semantics<parallel>, #tpu.dimension_semantics<parallel>], iteration_bounds = array<i64: 2, 1>, scalar_prefetch = 0 : i64, scratch_operands = 0 : i64, tpu.core_type = #tpu.core_type<tc>, window_params = [{transform_indices = @transform_0, window_bounds = array<i64: 1, 8, 256>}, {transform_indices = @transform_1, window_bounds = array<i64: 1, 8, 1>}]} {
    %0 = tpu.iota {dimensions = array<i32: 1>} : vector<1x256xi32>
    %c0 = arith.constant 0 : index
    %c0_0 = arith.constant 0 : index
    %c0_1 = arith.constant 0 : index
    %1 = vector.load %arg2[%c0, %c0_0, %c0_1] : memref<1x8x256xf32, #tpu.memory_space<vmem>>, vector<1x8x256xf32>
    %2 = vector.shape_cast %1 : vector<1x8x256xf32> to vector<8x256xf32>
    %cst = arith.constant 0.000000e+00 : f32
    %3 = vector.broadcast %cst : f32 to vector<8x1xf32>
    %cst_2 = arith.constant 0xFF800000 : f32
    %c0_i32 = arith.constant 0 : i32
    %cst_3 = arith.constant dense<0xFF800000> : vector<8xf32>
    %4 = vector.multi_reduction <maximumf>, %2, %cst_3 [1] : vector<8x256xf32> to vector<8xf32>
    %5 = vector.shape_cast %4 : vector<8xf32> to vector<8x1xf32>
    %6 = arith.addf %3, %5 : vector<8x1xf32>
    %7 = vector.broadcast %5 : vector<8x1xf32> to vector<8x256xf32>
    %8 = arith.cmpf oeq, %2, %7 : vector<8x256xf32>
    %c256_i32 = arith.constant 256 : i32
    %9 = vector.shape_cast %0 : vector<1x256xi32> to vector<1x256xi32>
    %10 = vector.broadcast %9 : vector<1x256xi32> to vector<8x256xi32>
    %11 = vector.broadcast %c256_i32 : i32 to vector<8x256xi32>
    %12 = arith.select %8, %10, %11 : vector<8x256xi1>, vector<8x256xi32>
    %cst_4 = arith.constant dense<2147483647> : vector<8xi32>
    %13 = vector.multi_reduction <minsi>, %12, %cst_4 [1] : vector<8x256xi32> to vector<8xi32>
    %14 = vector.shape_cast %13 : vector<8xi32> to vector<8x1xi32>
    %15 = vector.broadcast %0 : vector<1x256xi32> to vector<8x256xi32>
    %16 = vector.broadcast %14 : vector<8x1xi32> to vector<8x256xi32>
    %17 = arith.cmpi eq, %15, %16 : vector<8x256xi32>
    %18 = vector.broadcast %cst_2 : f32 to vector<8x256xf32>
    %19 = arith.select %17, %18, %2 : vector<8x256xi1>, vector<8x256xf32>
    %cst_5 = arith.constant dense<0xFF800000> : vector<8xf32>
    %20 = vector.multi_reduction <maximumf>, %19, %cst_5 [1] : vector<8x256xf32> to vector<8xf32>
    %21 = vector.shape_cast %20 : vector<8xf32> to vector<8x1xf32>
    %22 = arith.addf %6, %21 : vector<8x1xf32>
    %cst_6 = arith.constant 5.000000e-01 : f32
    %23 = vector.broadcast %cst_6 : f32 to vector<8x1xf32>
    %24 = arith.mulf %22, %23 : vector<8x1xf32>
    %c0_7 = arith.constant 0 : index
    %c0_8 = arith.constant 0 : index
    %c0_9 = arith.constant 0 : index
    %25 = vector.load %arg2[%c0_7, %c0_8, %c0_9] : memref<1x8x256xf32, #tpu.memory_space<vmem>>, vector<1x8x256xf32>
    %26 = vector.shape_cast %25 : vector<1x8x256xf32> to vector<8x256xf32>
    %cst_10 = arith.constant 0.000000e+00 : f32
    %27 = vector.broadcast %cst_10 : f32 to vector<8x256xf32>
    %28 = arith.subf %27, %26 : vector<8x256xf32>
    %cst_11 = arith.constant 0.000000e+00 : f32
    %29 = vector.broadcast %cst_11 : f32 to vector<8x1xf32>
    %cst_12 = arith.constant 0xFF800000 : f32
    %c0_i32_13 = arith.constant 0 : i32
    %cst_14 = arith.constant dense<0xFF800000> : vector<8xf32>
    %30 = vector.multi_reduction <maximumf>, %28, %cst_14 [1] : vector<8x256xf32> to vector<8xf32>
    %31 = vector.shape_cast %30 : vector<8xf32> to vector<8x1xf32>
    %32 = arith.addf %29, %31 : vector<8x1xf32>
    %33 = vector.broadcast %31 : vector<8x1xf32> to vector<8x256xf32>
    %34 = arith.cmpf oeq, %28, %33 : vector<8x256xf32>
    %c256_i32_15 = arith.constant 256 : i32
    %35 = vector.shape_cast %0 : vector<1x256xi32> to vector<1x256xi32>
    %36 = vector.broadcast %35 : vector<1x256xi32> to vector<8x256xi32>
    %37 = vector.broadcast %c256_i32_15 : i32 to vector<8x256xi32>
    %38 = arith.select %34, %36, %37 : vector<8x256xi1>, vector<8x256xi32>
    %cst_16 = arith.constant dense<2147483647> : vector<8xi32>
    %39 = vector.multi_reduction <minsi>, %38, %cst_16 [1] : vector<8x256xi32> to vector<8xi32>
    %40 = vector.shape_cast %39 : vector<8xi32> to vector<8x1xi32>
    %41 = vector.broadcast %0 : vector<1x256xi32> to vector<8x256xi32>
    %42 = vector.broadcast %40 : vector<8x1xi32> to vector<8x256xi32>
    %43 = arith.cmpi eq, %41, %42 : vector<8x256xi32>
    %44 = vector.broadcast %cst_12 : f32 to vector<8x256xf32>
    %45 = arith.select %43, %44, %28 : vector<8x256xi1>, vector<8x256xf32>
    %cst_17 = arith.constant dense<0xFF800000> : vector<8xf32>
    %46 = vector.multi_reduction <maximumf>, %45, %cst_17 [1] : vector<8x256xf32> to vector<8xf32>
    %47 = vector.shape_cast %46 : vector<8xf32> to vector<8x1xf32>
    %48 = arith.addf %32, %47 : vector<8x1xf32>
    %cst_18 = arith.constant 3.500000e-01 : f32
    %49 = vector.broadcast %cst_18 : f32 to vector<8x1xf32>
    %50 = arith.mulf %48, %49 : vector<8x1xf32>
    %51 = arith.subf %24, %50 : vector<8x1xf32>
    %cst_19 = arith.constant 5.000000e-01 : f32
    %52 = vector.broadcast %cst_19 : f32 to vector<8x1xf32>
    %53 = arith.mulf %51, %52 : vector<8x1xf32>
    %c0_20 = arith.constant 0 : index
    %c0_21 = arith.constant 0 : index
    %c0_22 = arith.constant 0 : index
    %54 = vector.load %arg3[%c0_20, %c0_21, %c0_22] : memref<1x8x1xf32, #tpu.memory_space<vmem>>, vector<1x8x1xf32>
    %55 = vector.shape_cast %54 : vector<1x8x1xf32> to vector<8x1xf32>
    %56 = vector.shape_cast %53 : vector<8x1xf32> to vector<1x8x1xf32>
    tpu.vector_store %arg3[%c0_20, %c0_21, %c0_22], %56 {strides = array<i32>} : memref<1x8x1xf32, #tpu.memory_space<vmem>>, vector<1x8x1xf32>,
    return
  }
  func.func @transform_0(%arg0: i32, %arg1: i32) -> (i32, i32, i32) {
    %c0_i32 = arith.constant 0 : i32
    %c0_i32_0 = arith.constant 0 : i32
    return %arg0, %arg1, %c0_i32 : i32, i32, i32
  }
  func.func @transform_1(%arg0: i32, %arg1: i32) -> (i32, i32, i32) {
    %c0_i32 = arith.constant 0 : i32
    %c0_i32_0 = arith.constant 0 : i32
    return %arg0, %arg1, %c0_i32 : i32, i32, i32
  }
}

</mosaic_0001>

<bundles_post_ra>
// kernel: tpu_custom_call.1
= control target key start
LH: loop header
LB: loop body
LE: loop exit
PB: predicated region body
PF: predicated region fallthrough
CT: control target
= control target key end

     0   :  { %6 = vsyncpa [#allocation3], 0  ;;  %s606_s0 = inlined_call_operand.hbm [shape: f32[2,8,256], index: 0, kind: input, shape index: {}]   ;;  %s607_s1 = inlined_call_operand.vmem [shape: f32[2,8,1], index: 1, kind: output, shape index: {}]  }
   0x1   :  { %8 = vsyncpa [#allocation3 + $0x1], 0  ;;  %s481_s6 = smov 0   ;;  %s483_s7 = smov 0  }
   0x2   :  { %s485_s8 = smov 0   ;;  %s487_s9 = smov 0  }
   0x3   :  { %s489_s10 = smov 0   ;;  %s491_s11 = smov 0  }
   0x4 LB: > { %s320_s12 = sadd.s32 4294967295, %s468_s11   ;;  %s26_s13 = sadd.s32 1, %s464_s10  ;;  %s468_s11 = sphi %s491_s11, %s14_s11   ;;  %s464_s10 = sphi %s489_s10, %s617_s10   ;;  %s460_s9 = sphi %s487_s9, %s616_s9   ;;  %s456_s8 = sphi %s485_s8, %s615_s8   ;;  %s452_s7 = sphi %s483_s7, %s614_s7   ;;  %s448_s6 = sphi %s481_s6, %s613_s6  }
   0x5   : > { %p28_p0 = scmp.ge.s32.totalorder %s26_s13, 2  ;;  %s35_s14 = sadd.s32 1, %s456_s8 }
   0x6   : > { %p42_p1 = scmp.ne.s32.totalorder %s456_s8, %s452_s7  ;;  %p43_p2 = scmp.eq.s32.totalorder %s468_s11, 0 }
   0x7   : > { %s619_s13 = smov (%p28_p0, %s26_s13), 0  ;;  %p48_p4 = scmp.ne.s32.totalorder %s452_s7, %s448_s6 }
   0x8   : > { %p517_p3 = por %p43_p2, %p42_p1  ;;  %s30_s16 = ssub.s32 %s464_s10, %s619_s13 }
   0x9   : > { %p49_p5 = scmp.eq.s32.totalorder %s320_s12, 0  ;;  %p33_p6 = scmp.eq.s32.totalorder %s30_s16, 0 }
   0xa   : > { %p339_p8 = scmp.lt.s32.totalorder %s468_s11, 2  ;;  %s100_s19 = sand.u32 1, %s456_s8  }
   0xb   : > { %p524_p7 = por %p49_p5, %p48_p4  ;;  %s332_s20 = sshll.u32 %s464_s10, 8 }
   0xc   : > { %s530_s18 = scalar_select %p33_p6, %s456_s8, %s35_s14  }
   0xd   : > { %s324_s21 = sshll.u32 %s100_s19, 4  ;;  %s537_s24 = scalar_lea.hbm %s606_s0, %s332_s20 }
   0xe   : > { %s104_s25 = scalar_lea.vmem [#allocation2], %s324_s21  ;;  %p541_p9 = pnand %p339_p8, %p517_p3 }
   0xf   : > { %s114_s26 = sshll.u32 %s104_s25, 4  ;;  %s101_s28 = scalar_lea.sflag [#allocation3], %s100_s19  ;;  %s545_s26 = int_to_ptr.vmem [resolvable:$true] %s114_s26 }
  0x10   : > { %s388_s29 = scalar_lea.hbm %s537_s24, 256  ;;  %p390_p13 = pneg %p541_p9 }
  0x11   : > { %p389_p12 = scmp.ne.s32.totalorder %s537_s24, %s388_s29  ;;  %s393_s3 = scalar_lea.hbm %s606_s0, 512 }
  0x12   : > { %p394_p2 = scmp.lt.u32.totalorder %s537_s24, %s606_s0  ;;  %p395_p3 = scmp.lt.u32.totalorder %s393_s3, %s388_s29 }
  0x13   : > { %p391_p0 = pnand %p390_p13, %p389_p12  ;;  %p397_p5 = scmp.lt.u32.totalorder %s388_s29, %s537_s24 }
  0x14   : > { %p396_p4 = por %p395_p3, %p394_p2 }
  0x15   : > { %p392_p1 = pneg %p391_p0 }
  0x16   : > { %p398_p6 = por %p397_p5, %p396_p4 }
  0x18   : > { %p399_p8 = pnand %p398_p6, %p392_p1 }
  0x1a   : > { %402 = shalt.err (!%p399_p8)
}
  0x1b   : > { %s403_s6 = scalar_lea.vmem %s545_s26, 256  ;;  %s470_s12 = smov [#allocation2]  }
  0x1c   : > { %p404_p12 = scmp.ne.s32.totalorder %s545_s26, %s403_s6  ;;  %s408_s14 = sshll.u32 %s470_s12, 4  ;;  %s409_s14 = int_to_ptr.vmem [resolvable:$false] %s408_s14 }
  0x1d   : > { %s410_s15 = scalar_lea.vmem %s409_s14, 512  ;;  %p411_p11 = scmp.lt.s32.totalorder %s545_s26, %s409_s14 }
  0x1e   : > { %p406_p0 = pnand %p404_p12, %p390_p13  ;;  %p412_p2 = scmp.lt.s32.totalorder %s410_s15, %s403_s6 }
  0x20   : > { %p407_p10 = pneg %p406_p0  ;;  %p413_p3 = por %p412_p2, %p411_p11 }
  0x22   : > { %p414_p4 = pnand %p413_p3, %p407_p10 }
  0x24   : > { %417 = shalt.err (!%p414_p4)
}
  0x25   : > { %338 = dma.hbm_to_vmem [thread:$0]  (!%p541_p9), %s537_s24, 256, %s545_s26, %s101_s28  }
  0x26   : > { %p611_p1 = scmp.lt.s32.totalorder %s468_s11, 3  ;;  %p612_p5 = scmp.ge.s32.totalorder %s468_s11, 1 }
  0x28   : > { %p120_p13 = pnand %p612_p5, %p611_p1 }
  0x29   : > { %s125_s16 = sand.u32 (!%p120_p13), 1, %s452_s7  }
  0x2a   : > { %123 = sbr.rel (%p120_p13) target bundleno = 652 (0x28c), region = 24  ;;  %s328_s19 = sshll.u32 (!%p120_p13), %s125_s16, 4 }
  0x2b   : > { %s126_s20 = scalar_lea.sflag (!%p120_p13), [#allocation3], %s125_s16  ;;  %s129_s21 = scalar_lea.vmem (!%p120_p13), [#allocation2], %s328_s19 }
  0x31   : > { %443 = dma.done.wait (%p524_p7), %s126_s20, 256  }
  0x32   : > { %445 = vsyncadd (%p524_p7), %s126_s20, 4294967040  ;;  %v160_v0 = vld [vmem:[%s129_s21] sm:$0xff]  ;;  %v161_v1 = vld [vmem:[%s129_s21 + $0x8] sm:$0xff]  ;;  %v157_v6 = vlaneseq  ;;  %p150_p7 = scmp.lt.s32.totalorder %s460_s9, 1  ;;  %vm232_vm12 = vcmask 7168  }
  0x33   : > { %v162_v2 = vmax.f32 %v160_v0, %v161_v1  ;;  %v195_v3 = vsub.f32 0.0, %v160_v0  ;;  %v196_v4 = vsub.f32 0.0, %v161_v1 }
  0x34   : > { %v158_v7 = vand.u32 127, %v157_v6  ;;  %s621_s9 = smov (!%p150_p7, %s460_s9), 1 }
  0x35   : > { %163 = vmax.xlane.f32.xlu0 %v162_v2  ;;  %v197_v5 = vmax.f32 %v195_v3, %v196_v4  ;;  %s329_s17 = sshll.u32 %s621_s9, 3 }
  0x36   : > { %v159_v8 = vadd.s32 128, %v158_v7  ;;  %s156_s24 = scalar_lea.vmem %s607_s1, %s329_s17 }
  0x39   : > { %198 = vmax.xlane.f32.xlu0 %v197_v5 }
  0xc2   : > { %v164_v9 = vpop.xlane.xlu0 %163 }
  0xc3   : > { %vm166_vm0 = vcmp.eq.f32.partialorder %v160_v0, %v164_v9  ;;  %vm167_vm1 = vcmp.eq.f32.partialorder %v161_v1, %v164_v9 }
  0xc4   : > { %v168_v10 = vsel %vm166_vm0, %v158_v7, 256  ;;  %v169_v11 = vsel %vm167_vm1, %v159_v8, 256 }
  0xc5   : > { %vm170_vm2 = vcmp.lt.s32.totalorder %v168_v10, %v169_v11 }
  0xc6   : > { %v199_v12 = vpop.xlane.xlu0 %198  ;;  %v171_v13 = vsel %vm170_vm2, %v168_v10, %v169_v11 }
  0xc7   : > { %vm201_vm3 = vcmp.eq.f32.partialorder %v195_v3, %v199_v12  ;;  %vm202_vm4 = vcmp.eq.f32.partialorder %v196_v4, %v199_v12  ;;  %v173_v14 = vshra.s32 %v171_v13, 16  ;;  %v172_v21 = vand.u32 65535, %v171_v13 }
  0xc8   : > { %v203_v15 = vsel %vm201_vm3, %v158_v7, 256  ;;  %v204_v16 = vsel %vm202_vm4, %v159_v8, 256 }
  0xc9   : > { %v175_v17 = vcvt.s32.f32 %v173_v14  ;;  %vm205_vm5 = vcmp.lt.s32.totalorder %v203_v15, %v204_v16  ;;  %v174_v23 = vcvt.s32.f32 %v172_v21 }
  0xca   : > { %v206_v18 = vsel %vm205_vm5, %v203_v15, %v204_v16 }
  0xcb   : > { %176 = vmin.xlane.f32.xlu1 %v175_v17  ;;  %v208_v19 = vshra.s32 %v206_v18, 16  ;;  %v207_v24 = vand.u32 65535, %v206_v18 }
  0xcd   : > { %v210_v20 = vcvt.s32.f32 %v208_v19  ;;  %v209_v27 = vcvt.s32.f32 %v207_v24 }
  0xcf   : > { %211 = vmin.xlane.f32.xlu1 %v210_v20 }
 0x158   : > { %v177_v22 = vpop.xlane.xlu1 %176 }
 0x159   : > { %vm178_vm6 = vcmp.eq.f32.partialorder %v175_v17, %v177_v22  ;;  %v183_v29 = vcvt.f32.s32 %v177_v22 }
 0x15a   : > { %v179_v25 = vsel %vm178_vm6, %v174_v23, inf }
 0x15b   : > { %180 = vmin.xlane.f32.xlu0 %v179_v25  ;;  %v184_v31 = vshll.u32 %v183_v29, 16 }
 0x15c   : > { %v212_v26 = vpop.xlane.xlu1 %211 }
 0x15d   : > { %vm213_vm7 = vcmp.eq.f32.partialorder %v210_v20, %v212_v26  ;;  %v218_v32 = vcvt.f32.s32 %v212_v26 }
 0x15e   : > { %v214_v28 = vsel %vm213_vm7, %v209_v27, inf }
 0x15f   : > { %215 = vmin.xlane.f32.xlu1 %v214_v28  ;;  %v219_v36 = vshll.u32 %v218_v32, 16 }
 0x1e8   : > { %v181_v30 = vpop.xlane.xlu0 %180 }
 0x1e9   : > { %v182_v33 = vcvt.f32.s32 %v181_v30 }
 0x1eb   : > { %v185_v34 = vadd.s32 %v184_v31, %v182_v33 }
 0x1ec   : > { %v216_v35 = vpop.xlane.xlu1 %215 }
 0x1ed   : > { %v217_v37 = vcvt.f32.s32 %v216_v35  ;;  %vm186_vm8 = vcmp.eq.s32.totalorder %v158_v7, %v185_v34  ;;  %vm187_vm9 = vcmp.eq.s32.totalorder %v159_v8, %v185_v34 }
 0x1ee   : > { %v188_v38 = vsel %vm186_vm8, -inf, %v160_v0  ;;  %v189_v39 = vsel %vm187_vm9, -inf, %v161_v1 }
 0x1ef   : > { %v220_v40 = vadd.s32 %v219_v36, %v217_v37  ;;  %v190_v41 = vmax.f32 %v188_v38, %v189_v39 }
 0x1f1   : > { %191 = vmax.xlane.f32.xlu0 %v190_v41  ;;  %vm221_vm10 = vcmp.eq.s32.totalorder %v158_v7, %v220_v40  ;;  %vm222_vm11 = vcmp.eq.s32.totalorder %v159_v8, %v220_v40 }
 0x1f2   : > { %v223_v42 = vsel %vm221_vm10, -inf, %v195_v3  ;;  %v224_v43 = vsel %vm222_vm11, -inf, %v196_v4 }
 0x1f3   : > { %v225_v44 = vmax.f32 %v223_v42, %v224_v43 }
 0x1f5   : > { %226 = vmax.xlane.f32.xlu1 %v225_v44 }
 0x27e   : > { %v192_v45 = vpop.xlane.xlu0 %191 }
 0x27f   : > { %v193_v46 = vadd.f32 %v192_v45, %v164_v9 }
 0x281   : > { %v194_v49 = vmul.f32 0.5, %v193_v46 }
 0x282   : > { %v227_v47 = vpop.xlane.xlu1 %226 }
 0x283   : > { %v228_v48 = vadd.f32 %v227_v47, %v199_v12 }
 0x285   : > { %v229_v50 = vmul.f32 0.35, %v228_v48 }
 0x287   : > { %v230_v51 = vsub.f32 %v194_v49, %v229_v50 }
 0x289   : > { %v231_v52 = vmul.f32 0.5, %v230_v51 }
 0x28b   : > { %233 = vst.msk [vmem:[%s156_s24] sm:$0xff] %vm232_vm12, %v231_v52 }
 0x28c PF: > { %s14_s11 = sadd.s32 1, %s468_s11   ;;  %s613_s6 = smov %s452_s7 }
 0x28d   : > { %p11_p9 = scmp.ge.s32.totalorder %s14_s11, 4   ;;  %s614_s7 = smov %s456_s8 }
 0x28e   : > { %s615_s8 = smov %s530_s18  ;;  %s616_s9 = smov %s464_s10 }
 0x28f   : > { %s617_s10 = smov %s619_s13  ;;  %13 = sbr.rel (!%p11_p9) target bundleno = 4 (0x4), region = 64 }
 0x296   :  { %259 = vsyncpa [#allocation3], 1 }
 0x297   :  { %261 = vsyncpa [#allocation3 + $0x1], 1 }

</bundles_post_ra>
